<compile_context>
chip_gen: v7x
topology: tpu7x:2x2x1
jax: 0.10.0
libtpu: 0.0.40
codegen_flags: <defaults>
</compile_context>

<pallas_src>
import jax
import jax.numpy as jnp
from jax.experimental import pallas as pl
from jax.experimental.pallas import tpu as pltpu


# ---------------------------------------------------------------------------
# Fused single-pass kernel: (tb, C, HW) tiles, channels on sublanes, HW on lanes.
# ---------------------------------------------------------------------------
def _se_fused_kernel(x_ref, w1_ref, b1_ref, w2_ref, b2_ref, o_ref):
    # x_ref/o_ref: (tb, C, HW)  w1: (C, Cr)  b1: (1, Cr)  w2: (Cr, C)  b2: (1, C)
    # Squeeze: cross-lane mean with f32 accumulation (no materialized f32 tile).
    y = jnp.mean(x_ref[...], axis=-1, dtype=jnp.float32)                 # (tb, C)
    # Excitation: FC -> ReLU -> FC -> sigmoid.  Tiny vs. the HBM stream.
    h = jnp.dot(y, w1_ref[...], preferred_element_type=jnp.float32) + b1_ref[...]
    h = jnp.maximum(h, 0.0)                                              # (tb, Cr)
    s = jnp.dot(h, w2_ref[...], preferred_element_type=jnp.float32) + b2_ref[...]
    s = jax.nn.sigmoid(s)                                                # (tb, C)
    # Scale: fresh read of the tile (don't keep it live across the FC math);
    # broadcast the gate over the spatial (lane) axis.  Gate is cast to the
    # activation dtype (<=1 ulp of bf16 vs. an f32 multiply) to avoid an extra
    # full-tile f32 pass.
    o_ref[...] = (x_ref[...] * s[:, :, None].astype(x_ref.dtype)).astype(o_ref.dtype)


# ---------------------------------------------------------------------------
# Two-pass fallback kernels (HW split for very large per-batch tiles).
# ---------------------------------------------------------------------------
def _make_pool_kernel(hw_total, thw, needs_mask):
    def kernel(x_ref, sum_ref):
        # x_ref: (1, C, thw)   sum_ref: (1, C, 1) f32, accumulated over the HW axis.
        h = pl.program_id(1)

        @pl.when(h == 0)
        def _init():
            sum_ref[...] = jnp.zeros_like(sum_ref)

        x = x_ref[...]
        if needs_mask:
            # Last HW chunk may extend past the array; OOB input values are
            # unspecified, so mask them out of the sum.
            idx = h * thw + jax.lax.broadcasted_iota(jnp.int32, x.shape, 2)
            x = jnp.where(idx < hw_total, x, jnp.zeros_like(x))
        sum_ref[...] += jnp.sum(x, axis=-1, keepdims=True, dtype=jnp.float32)

    return kernel


def _se_scale_kernel(x_ref, s_ref, o_ref):
    # x_ref/o_ref: (1, C, thw)   s_ref: (1, C, 1) f32 gate.
    # OOB columns of a partial edge block are discarded on store.
    o_ref[...] = (x_ref[...] * s_ref[...].astype(x_ref.dtype)).astype(o_ref.dtype)


# ---------------------------------------------------------------------------
# Wrapper
# ---------------------------------------------------------------------------
def _tpu_vmem_capacity_bytes():
    try:
        return int(pltpu.get_tpu_info().vmem_capacity_bytes)
    except Exception:
        return 64 << 20  # conservative default (v7x-like)


def se_layer(x, w1, b1, w2, b2, *, force_two_pass=False, thw_override=None):
    """SE forward.  x: (B, C, H, W) NCHW.  w1: (C, Cr), w2: (Cr, C) (PyTorch
    Linear weights stored transposed so the kernel computes y @ W), b1: (Cr,),
    b2: (C,)."""
    B, C, H, W = x.shape
    Cr = w1.shape[1]
    HW = H * W
    itemsize = jnp.dtype(x.dtype).itemsize

    # Free reshape: NCHW -> (B, C, HW).  No HBM transpose.
    x3 = x.reshape(B, C, HW)
    b1_2d = b1.reshape(1, Cr)
    b2_2d = b2.reshape(1, C)

    def _nbytes(a):
        return a.size * jnp.dtype(a.dtype).itemsize

    weight_bytes = _nbytes(w1) + _nbytes(w2) + _nbytes(b1) + _nbytes(b2)

    vmem_cap = _tpu_vmem_capacity_bytes()
    multi_core = vmem_cap <= (64 << 20)               # v7x: 64 MiB VMEM, 2 TensorCores
    vmem_limit = int(min(vmem_cap * 3 // 4, 96 << 20))
    tile_budget = vmem_limit - weight_bytes - (2 << 20)  # for double-buffered x + out tiles

    per_batch_bytes = C * HW * itemsize
    fused_fits = 4 * per_batch_bytes <= tile_budget

    if fused_fits and not force_two_pass:
        # ---------------- fused single-pass path ----------------
        tb = max(1, min(B, tile_budget // (4 * per_batch_bytes)))
        if multi_core and B >= 2:
            tb = min(tb, B // 2)                      # keep the parallel axis >= 2 on v7x
        while B % tb != 0:                            # divisor of B: no padded tail step
            tb -= 1
        if multi_core:                                # prefer an even grid on v7x
            while tb > 1 and (B // tb) % 2 != 0:
                tb -= 1
                while B % tb != 0:
                    tb -= 1
        tb = int(tb)
        grid = (B // tb,)
        # TODO(synk): for B == 1 on v7x the parallel grid has extent 1 (one TC idles);
        # a spatial-split two-pass variant would be needed to use both cores.

        cost = pl.CostEstimate(
            flops=4 * B * C * Cr + 2 * B * C * HW,
            transcendentals=B * C,
            bytes_accessed=2 * B * C * HW * itemsize + weight_bytes,
        )
        out3 = pl.pallas_call(
            _se_fused_kernel,
            out_shape=jax.ShapeDtypeStruct((B, C, HW), x.dtype),
            grid_spec=pltpu.PrefetchScalarGridSpec(
                num_scalar_prefetch=0,
                grid=grid,
                in_specs=[
                    pl.BlockSpec((tb, C, HW), lambda b: (b, 0, 0)),   # x, NCHW (free reshape)
                    pl.BlockSpec((C, Cr), lambda b: (0, 0)),          # w1 (resident)
                    pl.BlockSpec((1, Cr), lambda b: (0, 0)),          # b1
                    pl.BlockSpec((Cr, C), lambda b: (0, 0)),          # w2
                    pl.BlockSpec((1, C), lambda b: (0, 0)),           # b2
                ],
                out_specs=pl.BlockSpec((tb, C, HW), lambda b: (b, 0, 0)),
            ),
            compiler_params=pltpu.CompilerParams(
                dimension_semantics=("parallel",),
                vmem_limit_bytes=vmem_limit,
            ),
            cost_estimate=cost,
        )(x3, w1, b1_2d, w2, b2_2d)
        return out3.reshape(B, C, H, W)

    # ---------------- two-pass HW-chunked fallback ----------------
    if thw_override is not None:
        thw = int(thw_override)
    else:
        thw = max(128, (tile_budget // (4 * C * itemsize)) // 128 * 128)
    thw = min(thw, pl.cdiv(HW, 128) * 128)
    nhw = pl.cdiv(HW, thw)
    needs_mask = (HW % thw) != 0
    grid2 = (B, nhw)

    # Pass 1: per-(batch, channel) spatial sums accumulated over HW chunks.
    sums = pl.pallas_call(
        _make_pool_kernel(HW, thw, needs_mask),
        out_shape=jax.ShapeDtypeStruct((B, C, 1), jnp.float32),
        grid_spec=pltpu.PrefetchScalarGridSpec(
            num_scalar_prefetch=0,
            grid=grid2,
            in_specs=[pl.BlockSpec((1, C, thw), lambda b, h: (b, 0, h))],
            out_specs=pl.BlockSpec((1, C, 1), lambda b, h: (b, 0, 0)),
        ),
        compiler_params=pltpu.CompilerParams(
            dimension_semantics=("parallel", "arbitrary"),
            vmem_limit_bytes=vmem_limit,
        ),
        cost_estimate=pl.CostEstimate(
            flops=B * C * HW,
            transcendentals=0,
            bytes_accessed=B * C * HW * itemsize + B * C * 4,
        ),
    )(x3)

    # Excitation on the tiny (B, C) pooled vector in plain JAX (negligible cost).
    y = sums[:, :, 0] * (1.0 / HW)                                        # (B, C) f32
    h = jnp.maximum(y @ w1.astype(jnp.float32) + b1_2d.astype(jnp.float32), 0.0)
    s = jax.nn.sigmoid(h @ w2.astype(jnp.float32) + b2_2d.astype(jnp.float32))
    s3 = s[:, :, None]                                                    # (B, C, 1)

    # Pass 2: stream x * gate over HW chunks.
    out3 = pl.pallas_call(
        _se_scale_kernel,
        out_shape=jax.ShapeDtypeStruct((B, C, HW), x.dtype),
        grid_spec=pltpu.PrefetchScalarGridSpec(
            num_scalar_prefetch=0,
            grid=grid2,
            in_specs=[
                pl.BlockSpec((1, C, thw), lambda b, h: (b, 0, h)),
                pl.BlockSpec((1, C, 1), lambda b, h: (b, 0, 0)),
            ],
            out_specs=pl.BlockSpec((1, C, thw), lambda b, h: (b, 0, h)),
        ),
        compiler_params=pltpu.CompilerParams(
            dimension_semantics=("parallel", "parallel"),
            vmem_limit_bytes=vmem_limit,
        ),
        cost_estimate=pl.CostEstimate(
            flops=B * C * HW,
            transcendentals=0,
            bytes_accessed=2 * B * C * HW * itemsize + B * C * 4,
        ),
    )(x3, s3)
    return out3.reshape(B, C, H, W)


def reference_se(x, w1, b1, w2, b2):
    """Pure-JAX reference matching the PyTorch SELayer forward."""
    y = jnp.mean(x, axis=(2, 3))                       # (B, C)
    h = jnp.maximum(y @ w1 + b1, 0.0)                  # (B, Cr)
    s = jax.nn.sigmoid(h @ w2 + b2)                    # (B, C)
    return x * s[:, :, None, None]


def _make_inputs(key, B, C, H, W, reduction):
    Cr = C // reduction
    kx, k1, k2, k3, k4 = jax.random.split(key, 5)
    x = jax.random.normal(kx, (B, C, H, W), dtype=jnp.float32)
    # PyTorch Linear weights are (out, in); stored transposed so kernels do y @ W.
    w1 = jax.random.normal(k1, (C, Cr), dtype=jnp.float32) * 0.1
    b1 = jax.random.normal(k2, (Cr,), dtype=jnp.float32) * 0.1
    w2 = jax.random.normal(k3, (Cr, C), dtype=jnp.float32) * 0.1
    b2 = jax.random.normal(k4, (C,), dtype=jnp.float32) * 0.1
    return x, w1, b1, w2, b2


if __name__ == "__main__":
    key = jax.random.PRNGKey(0)
    k1, k2, k3 = jax.random.split(key, 3)

    # 1) Small demo shape (channel >= reduction so the hidden dim is >= 1).
    x, w1, b1, w2, b2 = _make_inputs(k1, B=2, C=32, H=16, W=16, reduction=16)
    out = jax.block_until_ready(se_layer(x, w1, b1, w2, b2))
    ref = reference_se(x, w1, b1, w2, b2)
    assert out.shape == x.shape
    assert jnp.allclose(out, ref, atol=1e-5, rtol=1e-5), "fused (small) mismatch"

    # 2) Realistic SE-ResNet34 stage shape (C=256, 14x14): fused path, sublane-
    #    aligned channels, full-extent (non-128-multiple) spatial lane dim.
    x, w1, b1, w2, b2 = _make_inputs(k2, B=2, C=256, H=14, W=14, reduction=16)
    out = jax.block_until_ready(se_layer(x, w1, b1, w2, b2))
    ref = reference_se(x, w1, b1, w2, b2)
    assert jnp.allclose(out, ref, atol=1e-5, rtol=1e-5), "fused (resnet shape) mismatch"

    # 3) Force the two-pass HW-chunked fallback (v7x VMEM-guard path), with an
    #    HW (=324) that is not a multiple of the 128-wide spatial chunk so both
    #    the masked squeeze and the partial edge store are exercised.
    x, w1, b1, w2, b2 = _make_inputs(k3, B=2, C=64, H=18, W=18, reduction=16)
    out = jax.block_until_ready(
        se_layer(x, w1, b1, w2, b2, force_two_pass=True, thw_override=128))
    ref = reference_se(x, w1, b1, w2, b2)
    assert jnp.allclose(out, ref, atol=1e-5, rtol=1e-5), "two-pass fallback mismatch"

    print("KERNEL_OK")
</pallas_src>

<mosaic_0001>
module attributes {stable_mosaic.version = 11 : i64} {
  func.func @_se_fused_kernel(%arg0: i32, %arg1: memref<1x32x256xf32, #tpu.memory_space<vmem>>, %arg2: memref<32x2xf32, #tpu.memory_space<vmem>>, %arg3: memref<1x2xf32, #tpu.memory_space<vmem>>, %arg4: memref<2x32xf32, #tpu.memory_space<vmem>>, %arg5: memref<1x32xf32, #tpu.memory_space<vmem>>, %arg6: memref<1x32x256xf32, #tpu.memory_space<vmem>>) attributes {dimension_semantics = [#tpu.dimension_semantics<parallel>], iteration_bounds = array<i64: 2>, scalar_prefetch = 0 : i64, scratch_operands = 0 : i64, tpu.core_type = #tpu.core_type<tc>, window_params = [{transform_indices = @transform_0, window_bounds = array<i64: 1, 32, 256>}, {pipeline_mode = #tpu.pipeline_mode<synchronous>, transform_indices = @transform_1, window_bounds = array<i64: 32, 2>}, {pipeline_mode = #tpu.pipeline_mode<synchronous>, transform_indices = @transform_2, window_bounds = array<i64: 1, 2>}, {pipeline_mode = #tpu.pipeline_mode<synchronous>, transform_indices = @transform_3, window_bounds = array<i64: 2, 32>}, {pipeline_mode = #tpu.pipeline_mode<synchronous>, transform_indices = @transform_4, window_bounds = array<i64: 1, 32>}, {transform_indices = @transform_5, window_bounds = array<i64: 1, 32, 256>}]} {
    %c0 = arith.constant 0 : index
    %c0_0 = arith.constant 0 : index
    %c0_1 = arith.constant 0 : index
    %0 = vector.load %arg1[%c0, %c0_0, %c0_1] : memref<1x32x256xf32, #tpu.memory_space<vmem>>, vector<1x32x256xf32>
    %cst = arith.constant dense<0.000000e+00> : vector<1x32xf32>
    %1 = vector.multi_reduction <add>, %0, %cst [2] : vector<1x32x256xf32> to vector<1x32xf32>
    %cst_2 = arith.constant 2.560000e+02 : f32
    %2 = vector.broadcast %cst_2 : f32 to vector<1x32xf32>
    %3 = arith.divf %1, %2 : vector<1x32xf32>
    %c0_3 = arith.constant 0 : index
    %c0_4 = arith.constant 0 : index
    %4 = vector.load %arg2[%c0_3, %c0_4] : memref<32x2xf32, #tpu.memory_space<vmem>>, vector<32x2xf32>
    %cst_5 = arith.constant dense<0.000000e+00> : vector<1x2xf32>
    %5 = tpu.matmul %3, %4, %cst_5 {dimension_numbers = #tpu.dot_dimension_numbers<[1], [0], [0], [1], [0, 0, 1, 1], [], []>} : vector<1x32xf32>, vector<32x2xf32>, vector<1x2xf32> -> vector<1x2xf32>
    %c0_6 = arith.constant 0 : index
    %c0_7 = arith.constant 0 : index
    %6 = vector.load %arg3[%c0_6, %c0_7] : memref<1x2xf32, #tpu.memory_space<vmem>>, vector<1x2xf32>
    %7 = arith.addf %5, %6 : vector<1x2xf32>
    %cst_8 = arith.constant 0.000000e+00 : f32
    %8 = vector.broadcast %cst_8 : f32 to vector<1x2xf32>
    %9 = arith.maximumf %7, %8 : vector<1x2xf32>
    %c0_9 = arith.constant 0 : index
    %c0_10 = arith.constant 0 : index
    %10 = vector.load %arg4[%c0_9, %c0_10] : memref<2x32xf32, #tpu.memory_space<vmem>>, vector<2x32xf32>
    %cst_11 = arith.constant dense<0.000000e+00> : vector<1x32xf32>
    %11 = tpu.matmul %9, %10, %cst_11 {dimension_numbers = #tpu.dot_dimension_numbers<[1], [0], [0], [1], [0, 0, 1, 1], [], []>} : vector<1x2xf32>, vector<2x32xf32>, vector<1x32xf32> -> vector<1x32xf32>
    %c0_12 = arith.constant 0 : index
    %c0_13 = arith.constant 0 : index
    %12 = vector.load %arg5[%c0_12, %c0_13] : memref<1x32xf32, #tpu.memory_space<vmem>>, vector<1x32xf32>
    %13 = arith.addf %11, %12 : vector<1x32xf32>
    %14 = arith.negf %13 : vector<1x32xf32>
    %15 = math.exp %14 : vector<1x32xf32>
    %cst_14 = arith.constant 1.000000e+00 : f32
    %16 = vector.broadcast %cst_14 : f32 to vector<1x32xf32>
    %17 = arith.addf %16, %15 : vector<1x32xf32>
    %18 = arith.divf %16, %17 : vector<1x32xf32>
    %c0_15 = arith.constant 0 : index
    %c0_16 = arith.constant 0 : index
    %c0_17 = arith.constant 0 : index
    %19 = vector.load %arg1[%c0_15, %c0_16, %c0_17] : memref<1x32x256xf32, #tpu.memory_space<vmem>>, vector<1x32x256xf32>
    %20 = vector.shape_cast %18 : vector<1x32xf32> to vector<1x32x1xf32>
    %21 = vector.broadcast %20 : vector<1x32x1xf32> to vector<1x32x256xf32>
    %22 = arith.mulf %19, %21 : vector<1x32x256xf32>
    %c0_18 = arith.constant 0 : index
    %c0_19 = arith.constant 0 : index
    %c0_20 = arith.constant 0 : index
    %23 = vector.load %arg6[%c0_18, %c0_19, %c0_20] : memref<1x32x256xf32, #tpu.memory_space<vmem>>, vector<1x32x256xf32>
    tpu.vector_store %arg6[%c0_18, %c0_19, %c0_20], %22 {strides = array<i32>} : memref<1x32x256xf32, #tpu.memory_space<vmem>>, vector<1x32x256xf32>,
    return
  }
  func.func @transform_0(%arg0: i32) -> (i32, i32, i32) {
    %c0_i32 = arith.constant 0 : i32
    %c0_i32_0 = arith.constant 0 : i32
    %c0_i32_1 = arith.constant 0 : i32
    return %arg0, %c0_i32, %c0_i32_0 : i32, i32, i32
  }
  func.func @transform_1(%arg0: i32) -> (i32, i32) {
    %c0_i32 = arith.constant 0 : i32
    %c0_i32_0 = arith.constant 0 : i32
    %c0_i32_1 = arith.constant 0 : i32
    return %c0_i32, %c0_i32_0 : i32, i32
  }
  func.func @transform_2(%arg0: i32) -> (i32, i32) {
    %c0_i32 = arith.constant 0 : i32
    %c0_i32_0 = arith.constant 0 : i32
    %c0_i32_1 = arith.constant 0 : i32
    return %c0_i32, %c0_i32_0 : i32, i32
  }
  func.func @transform_3(%arg0: i32) -> (i32, i32) {
    %c0_i32 = arith.constant 0 : i32
    %c0_i32_0 = arith.constant 0 : i32
    %c0_i32_1 = arith.constant 0 : i32
    return %c0_i32, %c0_i32_0 : i32, i32
  }
  func.func @transform_4(%arg0: i32) -> (i32, i32) {
    %c0_i32 = arith.constant 0 : i32
    %c0_i32_0 = arith.constant 0 : i32
    %c0_i32_1 = arith.constant 0 : i32
    return %c0_i32, %c0_i32_0 : i32, i32
  }
  func.func @transform_5(%arg0: i32) -> (i32, i32, i32) {
    %c0_i32 = arith.constant 0 : i32
    %c0_i32_0 = arith.constant 0 : i32
    %c0_i32_1 = arith.constant 0 : i32
    return %arg0, %c0_i32, %c0_i32_0 : i32, i32, i32
  }
}

</mosaic_0001>

<bundles_post_ra>
// kernel: tpu_custom_call.1
= control target key start
LH: loop header
LB: loop body
LE: loop exit
PB: predicated region body
PF: predicated region fallthrough
CT: control target
= control target key end

     0   :  { %10 = vsyncpa [#allocation3], 0  ;;  %s1048_s0 = inlined_call_operand.hbm [shape: f32[2,32,256], index: 0, kind: input, shape index: {}]   ;;  %s1049_s1 = inlined_call_operand.vmem [shape: f32[32,2], index: 1, kind: input, shape index: {}]   ;;  %s1050_s2 = inlined_call_operand.vmem [shape: f32[1,2], index: 2, kind: input, shape index: {}]   ;;  %s1051_s3 = inlined_call_operand.vmem [shape: f32[2,32], index: 3, kind: input, shape index: {}]   ;;  %s1052_s4 = inlined_call_operand.vmem [shape: f32[1,32], index: 4, kind: input, shape index: {}]   ;;  %s1053_s5 = inlined_call_operand.hbm [shape: f32[2,32,256], index: 5, kind: output, shape index: {}]  }
   0x1   :  { %12 = vsyncpa [#allocation3 + $0x1], 0 }
   0x2   :  { %13 = vsyncpa [#allocation4], 0 }
   0x3   :  { %15 = vsyncpa [#allocation4 + $0x1], 0  ;;  %s829_s18 = smov 0   ;;  %s831_s19 = smov 0  }
   0x4   :  { %s833_s20 = smov 0   ;;  %s835_s21 = smov 0  }
   0x5 LB: > { %s850_s22 = sadd.s32 4294967295, %s788_s21   ;;  %s586_s23 = sadd.s32 4294967294, %s788_s21   ;;  %s788_s21 = sphi %s835_s21, %s1066_s21   ;;  %s784_s20 = sphi %s833_s20, %s1065_s20   ;;  %s780_s19 = sphi %s831_s19, %s1064_s19   ;;  %s776_s18 = sphi %s829_s18, %s1063_s18  }
   0x6   : > { %s854_s24 = sadd.s32 1, %s788_s21   ;;  %s28_s25 = sadd.s32 1, %s784_s20 }
   0x7   : > { %s25_s26 = ssub.s32 %s788_s21, %s854_s24  ;;  %p35_p0 = scmp.ne.s32.totalorder %s784_s20, %s780_s19 }
   0x8   : > { %p26_p1 = scmp.eq.s32.totalorder %s25_s26, 0  ;;  %p36_p2 = scmp.eq.s32.totalorder %s788_s21, 0 }
   0x9   : > { %p41_p3 = scmp.ne.s32.totalorder %s780_s19, %s776_s18  ;;  %p42_p4 = scmp.eq.s32.totalorder %s850_s22, 0 }
   0xa   : > { %s866_s27 = scalar_select %p26_p1, %s784_s20, %s28_s25  }
   0xb   : > { %p868_p5 = por %p36_p2, %p35_p0  ;;  %p872_p6 = por %p42_p4, %p41_p3 }
   0xc   : > { %p149_p7 = scmp.eq.s32.totalorder %s850_s22, 1  ;;  %p155_p8 = scmp.eq.s32.totalorder %s586_s23, 1 }
   0xd   : > { %p647_p10 = scmp.lt.s32.totalorder %s788_s21, 2  ;;  %s187_s7 = sand.u32 1, %s784_s20  }
   0xe   : > { %p879_p11 = por %p149_p7, %p35_p0  ;;  %p883_p12 = por %p155_p8, %p41_p3 }
   0xf   : > { %s604_s8 = sshll.u32 %s788_s21, 10  ;;  %s589_s9 = sshll.u32 %s187_s7, 6 }
  0x10   : > { %s1057_s30 = scalar_select %p879_p11, 1, 0 }
  0x11   : > { %s1058_s6 = scalar_select %p883_p12, 1, 0 }
  0x12   : > { %s892_s12 = scalar_lea.hbm %s1048_s0, %s604_s8  ;;  %s191_s13 = scalar_lea.vmem [#allocation2], %s589_s9 }
  0x13   : > { %s198_s14 = sshll.u32 %s191_s13, 4  ;;  %p896_p13 = pnand %p647_p10, %p868_p5  ;;  %s900_s14 = int_to_ptr.vmem [resolvable:$true] %s198_s14 }
  0x14   : > { %s902_s16 = scalar_lea.sflag [#allocation3], %s187_s7  ;;  %s692_s17 = scalar_lea.hbm %s892_s12, 1024 }
  0x15   : > { %p693_p0 = scmp.ne.s32.totalorder %s892_s12, %s692_s17  ;;  %p694_p1 = pneg %p896_p13 }
  0x16   : > { %s697_s26 = scalar_lea.hbm %s1048_s0, 2048  ;;  %p698_p4 = scmp.lt.u32.totalorder %s892_s12, %s1048_s0 }
  0x17   : > { %p695_p2 = pnand %p694_p1, %p693_p0  ;;  %p699_p5 = scmp.lt.u32.totalorder %s697_s26, %s692_s17 }
  0x18   : > { %p701_p8 = scmp.lt.u32.totalorder %s692_s17, %s892_s12 }
  0x19   : > { %p696_p3 = pneg %p695_p2  ;;  %p700_p7 = por %p699_p5, %p698_p4 }
  0x1b   : > { %p702_p10 = por %p701_p8, %p700_p7 }
  0x1d   : > { %p703_p9 = pnand %p702_p10, %p696_p3 }
  0x1f   : > { %706 = shalt.err (!%p703_p9)
}
  0x20   : > { %s707_s7 = scalar_lea.vmem %s900_s14, 1024  ;;  %s790_s9 = smov [#allocation2]  }
  0x21   : > { %p708_p0 = scmp.ne.s32.totalorder %s900_s14, %s707_s7  ;;  %s712_s10 = sshll.u32 %s790_s9, 4  ;;  %s713_s10 = int_to_ptr.vmem [resolvable:$false] %s712_s10 }
  0x22   : > { %s714_s11 = scalar_lea.vmem %s713_s10, 2048  ;;  %p715_p11 = scmp.lt.s32.totalorder %s900_s14, %s713_s10 }
  0x23   : > { %p710_p2 = pnand %p708_p0, %p694_p1  ;;  %p716_p4 = scmp.lt.s32.totalorder %s714_s11, %s707_s7 }
  0x25   : > { %p711_p12 = pneg %p710_p2  ;;  %p717_p5 = por %p716_p4, %p715_p11 }
  0x27   : > { %p718_p7 = pnand %p717_p5, %p711_p12 }
  0x29   : > { %721 = shalt.err (!%p718_p7)
}
  0x2a   : > { %s791_s13 = smov 256   ;;  %s792_s17 = smov 16  }
  0x2b   : > { %642 = dma.hbm_to_vmem [thread:$0]  (!%p896_p13), %s892_s12, 1024, %s900_s14, %s902_s16, %s791_s13, %s791_s13, %s792_s17  }
  0x2c   : > { %p592_p9 = scmp.ge.s32.totalorder %s788_s21, 1  ;;  %p206_p1 = scmp.lt.s32.totalorder %s788_s21, 3 }
  0x2e   : > { %p207_p3 = pnand %p592_p9, %p206_p1 }
  0x2f   : > { %s933_s23 = sand.u32 (!%p207_p3), 1, %s780_s19  }
  0x30   : > { %210 = sbr.rel (%p207_p3) target bundleno = 810 (0x32a), region = 40  ;;  %s593_s25 = sshll.u32 (!%p207_p3), %s933_s23, 6 }
  0x31   : > { %s213_s26 = scalar_lea.sflag (!%p207_p3), [#allocation3], %s933_s23  ;;  %s216_s28 = scalar_lea.vmem (!%p207_p3), [#allocation2], %s593_s25 }
  0x37   : > { %767 = dma.done.wait (%p872_p6), %s213_s26, 1024  }
  0x38   : > { %769 = vsyncadd (%p872_p6), %s213_s26, 4294966272  ;;  %v943_v0 = vld [vmem:[%s216_s28] sm:$0xff]  ;;  %v945_v1 = vld [vmem:[%s216_s28 + $0x8] sm:$0xff]  ;;  %v793_v15 = vmov 0.0|0.0   ;;  %vm794_vm0 = vmmov 0   ;;  %v795_v19 = vmov 0.0   ;;  %v277_v20 = vlaneseq }
  0x39   : > { %v947_v2 = vld [vmem:[%s216_s28 + $0x20] sm:$0xff]  ;;  %v251_v3 = vadd.f32 %v945_v1, %v943_v0  ;;  %v951_v4 = vld [vmem:[%s216_s28 + $0x28] sm:$0xff]  ;;  %v953_v5 = vld [vmem:[%s216_s28 + $0x10] sm:$0xff]  ;;  %629 = vmatprep.subr.bf16.mxu0 %v793_v15  ;;  %621 = vmatprep.mubr.msk.f32.mxu0 %vm794_vm0, %v795_v19  ;;  %vm288_vm1 = vcmask 130112   ;;  %vm295_vm2 = vcmask 195712   ;;  %vm302_vm3 = vcmask 261312  }
  0x3a   : > { %v955_v6 = vld [vmem:[%s216_s28 + $0x18] sm:$0xff]  ;;  %v257_v7 = vadd.f32 %v951_v4, %v947_v2  ;;  %v959_v8 = vld [vmem:[%s216_s28 + $0x30] sm:$0xff]  ;;  %v268_v12 = vld [vmem:[%s1049_s1] sm:$0xff]  ;;  %624 = vmatprep.subr.mxu1 %v795_v19  ;;  %626 = vmatprep.mubr.msk.f32.mxu1 %vm794_vm0, %v795_v19  ;;  %v278_v21 = vand.u32 127, %v277_v20  ;;  %v280_v22 = vshrl.u32 %v277_v20, 7  ;;  %vm304_vm4 = vcmask 261120  }
  0x3b   : > { %v961_v9 = vld [vmem:[%s216_s28 + $0x38] sm:$0xff]  ;;  %252 = vadd.xlane.f32.xlu0 %v251_v3  ;;  %v254_v10 = vadd.f32 %v955_v6, %v953_v5  ;;  %v269_v13 = vld [vmem:[%s1049_s1 + $0x8] sm:$0xff]  ;;  %v270_v16 = vld [vmem:[%s1049_s1 + $0x10] sm:$0xff]  ;;  %vm384_vm5 = vcmask 1041408   ;;  %vm380_vm6 = vcmask 15360   ;;  %s242_s29 = scalar_lea.vmem [#allocation5], %s593_s25 }
  0x3c   : > { %258 = vadd.xlane.f32.xlu1 %v257_v7  ;;  %v260_v11 = vadd.f32 %v961_v9, %v959_v8  ;;  %v630_v14 = vpack.c.bf16 %v269_v13, %v268_v12  ;;  %v271_v17 = vld [vmem:[%s1049_s1 + $0x18] sm:$0xff]  ;;  %v283_v23 = vadd.s32 4294967288, %v278_v21  ;;  %v290_v25 = vadd.s32 4294967280, %v278_v21  ;;  %v378_v45 = vld [vmem:[%s1051_s3] sm:$0x3]  ;;  %s513_s12 = sshll.u32 %s242_s29, 4  ;;  %s997_s12 = int_to_ptr.vmem [resolvable:$true] %s513_s12 }
  0x3d   : > { %v633_v18 = vpack.c.bf16 %v271_v17, %v270_v16  ;;  %v297_v26 = vadd.s32 4294967272, %v278_v21  ;;  %v281_v28 = vsub.s32 %v278_v21, %v280_v22  ;;  %625 = vmatpush3.msk.msra.mxu1 %vm384_vm5, %v378_v45  ;;  %v272_v46 = vld [vmem:[%s1050_s2] sm:$0x1]  ;;  %v466_v58 = vsub.s32 0, %v280_v22  ;;  %s605_s14 = sshll.u32 %s850_s22, 10  ;;  %s500_s22 = scalar_lea.sflag [#allocation4], %s933_s23 }
  0x3e   : > { %631 = vmatpush3.bf16.msra.mxu0 %v630_v14  ;;  %v286_v30 = vsub.s32 %v283_v23, %v280_v22  ;;  %v293_v31 = vsub.s32 %v290_v25, %v280_v22  ;;  %v379_v51 = vld [vmem:[%s1052_s4] sm:$0x1]  ;;  %s1002_s16 = scalar_lea.hbm %s1053_s5, %s605_s14  ;;  %s722_s8 = scalar_lea.vmem %s997_s12, 1024 }
  0x3f   : > { %255 = vadd.xlane.f32.xlu0 %v254_v10  ;;  %632 = vmatprep.subr.bf16.mxu0 %v793_v15  ;;  %v300_v34 = vsub.s32 %v297_v26, %v280_v22  ;;  %p723_p6 = scmp.ne.s32.totalorder %s997_s12, %s722_s8  ;;  %p1060_p11 = scmp.ne.s32.totalorder %s1057_s30, 0 }
  0x40   : > { %261 = vadd.xlane.f32.xlu1 %v260_v11  ;;  %s796_s7 = smov [#allocation5]  }
  0x41   : > { %p724_p12 = pnand %p723_p6, %p1060_p11  ;;  %s726_s9 = sshll.u32 %s796_s7, 4  ;;  %s727_s9 = int_to_ptr.vmem [resolvable:$false] %s726_s9 }
  0x42   : > { %634 = vmatpush3.bf16.msra.mxu0 %v633_v18  ;;  %s728_s10 = scalar_lea.vmem %s727_s9, 2048  ;;  %p729_p8 = scmp.lt.s32.totalorder %s997_s12, %s727_s9 }
  0x43   : > { %p725_p13 = pneg %p724_p12  ;;  %p730_p10 = scmp.lt.s32.totalorder %s728_s10, %s722_s8 }
  0x45   : > { %p731_p0 = por %p730_p10, %p729_p8 }
  0x47   : > { %p732_p2 = pnand %p731_p0, %p725_p13 }
  0xc8   : > { %v253_v24 = vpop.xlane.xlu0 %252 }
  0xc9   : > { %v259_v27 = vpop.xlane.xlu1 %258  ;;  %v264_v29 = vmul.f32 0.00390625, %v253_v24 }
  0xca   : > { %v266_v32 = vmul.f32 0.00390625, %v259_v27 }
  0xcb   : > { %v282_v38 = vrot.slane %v264_v29, %v281_v28 }
  0xcc   : > { %v256_v33 = vpop.xlane.xlu0 %255  ;;  %v294_v40 = vrot.slane %v266_v32, %v293_v31 }
  0xcd   : > { %v265_v35 = vmul.f32 0.00390625, %v256_v33  ;;  %v262_v36 = vpop.xlane.xlu1 %261 }
  0xce   : > { %v267_v37 = vmul.f32 0.00390625, %v262_v36 }
  0xcf   : > { %v287_v39 = vrot.slane %v265_v35, %v286_v30 }
  0xd0   : > { %v301_v41 = vrot.slane %v267_v37, %v300_v34 }
  0xd1   : > { %v289_v42 = vsel %vm288_vm1, %v287_v39, %v282_v38 }
  0xd2   : > { %v296_v43 = vsel %vm295_vm2, %v294_v40, %v289_v42 }
  0xd3   : > { %v303_v44 = vsel %vm302_vm3, %v301_v41, %v296_v43 }
  0xd4   : > { %622 = vmatmul.mubr.msk.f32.vlgmr.msra.gmra.mrb[0].mxu0 %vm304_vm4, %v303_v44 }
 0x1a7   : > { %v373_v47 = vpop.f32.mrb[0].mxu0 }
 0x1a8   : > { %v374_v48 = vadd.f32 %v373_v47, %v272_v46  ;;  %v623_v49 = vpop.f32.mrb[1].mxu0 }
 0x1aa   : > { %v377_v50 = vmax.f32 %v374_v48, 0.0 }
 0x1ac   : > { %627 = vmatmul.mubr.msk.f32.vlgmr.msra.gmra.mrb[0].mxu1 %vm380_vm6, %v377_v50 }
 0x27f   : > { %v454_v52 = vpop.f32.mrb[0].mxu1 }
 0x280   : > { %v455_v53 = vadd.f32 %v454_v52, %v379_v51  ;;  %v628_v54 = vpop.f32.mrb[1].mxu1 }
 0x282   : > { %v598_v55 = vmul.f32 -1.442695, %v455_v53 }
 0x284   : > { %688 = vpow2.f32 %v598_v55 }
 0x28e   : > { %v689_v56 = vpop.eup %688 }
 0x28f   : > { %v461_v57 = vadd.f32 1.0, %v689_v56 }
 0x291   : > { %690 = vrcp.f32 %v461_v57 }
 0x29b   : > { %v691_v59 = vpop.eup %690 }
 0x29c   : > { %v467_v60 = vrot.slane %v691_v59, %v466_v58 }
 0x29e   : > { %473 = vbcast.lane.b32.xlu1 %v467_v60, 264  ;;  %469 = vbcast.lane.b32.xlu0 %v467_v60, 256 }
 0x2a2   : > { %477 = vbcast.lane.b32.xlu1 %v467_v60, 272 }
 0x2a6   : > { %481 = vbcast.lane.b32.xlu1 %v467_v60, 280 }
 0x310   : > { %v474_v61 = vpop.permute.xlu1 %473  ;;  %v470_v62 = vpop.permute.xlu0 %469 }
 0x311   : > { %v485_v63 = vmul.f32 %v474_v61, %v953_v5  ;;  %v486_v3 = vmul.f32 %v474_v61, %v955_v6  ;;  %v483_v7 = vmul.f32 %v470_v62, %v943_v0  ;;  %v484_v10 = vmul.f32 %v470_v62, %v945_v1 }
 0x313   : > { %493 = vst [vmem:[%s242_s29 + $0x10] sm:$0xff] %v485_v63  ;;  %494 = vst [vmem:[%s242_s29 + $0x18] sm:$0xff] %v486_v3 }
 0x314   : > { %491 = vst [vmem:[%s242_s29] sm:$0xff] %v483_v7  ;;  %492 = vst [vmem:[%s242_s29 + $0x8] sm:$0xff] %v484_v10  ;;  %v478_v11 = vpop.permute.xlu1 %477 }
 0x315   : > { %v487_v12 = vmul.f32 %v478_v11, %v947_v2  ;;  %v488_v5 = vmul.f32 %v478_v11, %v951_v4 }
 0x317   : > { %495 = vst [vmem:[%s242_s29 + $0x20] sm:$0xff] %v487_v12  ;;  %496 = vst [vmem:[%s242_s29 + $0x28] sm:$0xff] %v488_v5 }
 0x318   : > { %v482_v0 = vpop.permute.xlu1 %481 }
 0x319   : > { %v489_v1 = vmul.f32 %v482_v0, %v959_v8  ;;  %v490_v2 = vmul.f32 %v482_v0, %v961_v9 }
 0x31b   : > { %497 = vst [vmem:[%s242_s29 + $0x30] sm:$0xff] %v489_v1  ;;  %498 = vst [vmem:[%s242_s29 + $0x38] sm:$0xff] %v490_v2 }
 0x31c   : > { %735 = shalt.err (!%p732_p2)
}
 0x31d   : > { %s736_s11 = scalar_lea.hbm %s1002_s16, 1024  ;;  %s740_s26 = scalar_lea.hbm %s1053_s5, 2048 }
 0x31e   : > { %p737_p4 = scmp.ne.s32.totalorder %s1002_s16, %s736_s11  ;;  %p741_p9 = scmp.lt.u32.totalorder %s1002_s16, %s1053_s5 }
 0x31f   : > { %p742_p1 = scmp.lt.u32.totalorder %s740_s26, %s736_s11  ;;  %p744_p6 = scmp.lt.u32.totalorder %s736_s11, %s1002_s16 }
 0x320   : > { %p738_p5 = pnand %p737_p4, %p1060_p11 }
 0x321   : > { %p743_p3 = por %p742_p1, %p741_p9 }
 0x322   : > { %p739_p7 = pneg %p738_p5 }
 0x323   : > { %p745_p12 = por %p744_p6, %p743_p3 }
 0x325   : > { %p746_p13 = pnand %p745_p12, %p739_p7 }
 0x327   : > { %749 = shalt.err (!%p746_p13)
}
 0x328   : > { %s797_s14 = smov 256   ;;  %s798_s25 = smov 16  }
 0x329   : > { %637 = dma.vmem_to_hbm [thread:$0]  (%p1060_p11), %s997_s12, 1024, %s1002_s16, %s500_s22, %s797_s14, %s797_s14, %s798_s25  }
 0x32a PF: > { %s528_s15 = sand.u32 1, %s776_s18   ;;  %p1061_p8 = scmp.ne.s32.totalorder %s1058_s6, 0 }
 0x32b   : > { %p1062_p10 = scmp.ge.s32.totalorder %s788_s21, 2  ;;  %s529_s8 = scalar_lea.sflag [#allocation4], %s528_s15 }
 0x32d   : > { %p644_p0 = pnand %p1062_p10, %p1061_p8 }
 0x32f   : > { %771 = dma.done.wait (!%p644_p0), %s529_s8, 1024  }
 0x330   : > { %773 = vsyncadd (!%p644_p0), %s529_s8, 4294966272  ;;  %p18_p2 = scmp.ge.s32.totalorder %s854_s24, 4   ;;  %s1063_s18 = smov %s780_s19 }
 0x331   : > { %s1064_s19 = smov %s784_s20  ;;  %s1065_s20 = smov %s866_s27 }
 0x332   : > { %s1066_s21 = smov %s854_s24  ;;  %20 = sbr.rel (!%p18_p2) target bundleno = 5 (0x5), region = 85 }
 0x339   :  { %534 = vsyncpa [#allocation3], 1 }
 0x33a   :  { %536 = vsyncpa [#allocation3 + $0x1], 1 }
 0x33b   :  { %537 = vsyncpa [#allocation4], 1 }
 0x33c   :  { %539 = vsyncpa [#allocation4 + $0x1], 1 }

</bundles_post_ra>
